<compile_context>
chip_gen: v7x
topology: tpu7x:2x2x1
jax: 0.10.0
libtpu: 0.0.40
codegen_flags: <defaults>
</compile_context>

<pallas_src>
import math

import jax
import jax.numpy as jnp
from jax.experimental import pallas as pl
from jax.experimental.pallas import tpu as pltpu

_LOG_10000 = math.log(10000.0)
_HALF_PI = 0.5 * math.pi


def _vmem_budget_and_limit():
    """Pick the per-step VMEM budget and scoped limit per generation:
    conservative on 64-MiB parts (v7x), roomier on 128-MiB parts (v5e/v6e)."""
    try:
        info = pltpu.get_tpu_info()
        cap = getattr(info, "vmem_capacity_bytes", 64 << 20)
    except Exception:  # pragma: no cover - fall back to the smallest part
        cap = 64 << 20
    if cap > (64 << 20):            # v5e / v6e: 128 MiB physical VMEM
        return 24 << 20, 64 << 20
    return 12 << 20, 32 << 20       # v7x / unknown: stay under the 32 MiB scoped cap


# ---------------------------------------------------------------------------
# Lane-dense path: x viewed as (B, S*D), last axis tiled in multiples of 128.
# Requires D to be a power of two so pos/col come from shifts/masks.
# ---------------------------------------------------------------------------
def _make_flat_kernel(d_model: int):
    shift = d_model.bit_length() - 1          # d_model is a power of two
    mask = d_model - 1
    neg_log = -_LOG_10000 / d_model

    def kernel(x_ref, o_ref):
        # x_ref / o_ref: (tB, tF) block of the (B, S*D) flattened input.
        _, tF = x_ref.shape
        f0 = pl.program_id(1) * tF            # flat element offset of this tile

        # Global flattened (seq, feature) index as a single (1, tF) row: the PE
        # row is batch-invariant and broadcast over the tB batch sublanes.
        idx = f0 + jax.lax.broadcasted_iota(jnp.int32, (1, tF), 1)
        pos = (idx >> shift).astype(jnp.float32)      # idx // d_model (shift)
        col = idx & mask                              # idx %  d_model (mask)
        odd = col & 1
        pair2 = (col - odd).astype(jnp.float32)       # == 2*(col//2), no int divide
        inv_freq = jnp.exp(pair2 * neg_log)           # (1, tF)

        # cos(x) = sin(x + pi/2): one transcendental covers even & odd columns.
        angle = pos * inv_freq + odd.astype(jnp.float32) * _HALF_PI
        pe = jnp.sin(angle)                           # (1, tF)

        # Ragged last tile: positions past S are still evaluated; that is safe
        # only because Pallas masks out-of-bounds output writes.
        o_ref[...] = x_ref[...] + pe.astype(x_ref.dtype)

    return kernel


def _pick_tiles_flat(B, F, itemsize, budget):
    sub = max(1, 32 // itemsize)          # packed-sublane granularity (8 f32 / 16 bf16 / 32 i8)

    def step_bytes(tB, tF):
        io = 2 * 2 * tB * tF * itemsize   # in + out, double-buffered
        row = 4 * tF * 4                  # (1, tF) f32 temporaries (idx/pos/angle/pe)
        bcast = tB * tF * 4               # slack for the broadcasted f32 add temp
        return io + row + bcast

    # Batch tile: full B if it fits at the minimum lane-dense width, else the
    # largest sublane-aligned tile that does.
    tB = B
    if B > sub and step_bytes(B, 128) > budget:
        cap = max(sub, budget // step_bytes(1, 128))
        tB = min(B, (cap // sub) * sub)

    # Flat tile: largest multiple of 128 that fits (full extent if everything fits).
    max_tf = budget // step_bytes(tB, 1)
    tF = F if max_tf >= F else max(128, (max_tf // 128) * 128)

    # v7x megacore: guarantee >= 2 grid steps whenever the input allows it.
    if pl.cdiv(B, tB) * pl.cdiv(F, tF) < 2 and F >= 256:
        tF = ((pl.cdiv(F, 2) + 127) // 128) * 128
    return tB, tF


# ---------------------------------------------------------------------------
# (B, S, D) path: used when D is already a multiple of 128 (already lane-dense)
# or when D is not a power of two.
# ---------------------------------------------------------------------------
def _pos_enc_3d_kernel(x_ref, o_ref):
    # x_ref / o_ref: (tB, tS, D) block.
    _, tS, D = x_ref.shape
    s0 = pl.program_id(1) * tS

    pos = (s0 + jax.lax.broadcasted_iota(jnp.int32, (tS, 1), 0)).astype(jnp.float32)
    col = jax.lax.broadcasted_iota(jnp.int32, (1, D), 1)
    odd = col & 1
    pair2 = (col - odd).astype(jnp.float32)
    # Grid-invariant (D exps per step): recompute accepted consciously, it is
    # negligible next to the (tS, D) sin and the HBM traffic.
    inv_freq = jnp.exp(pair2 * (-_LOG_10000 / D))      # (1, D)
    angle = pos * inv_freq + odd.astype(jnp.float32) * _HALF_PI
    pe = jnp.sin(angle)                                # (tS, D)

    o_ref[...] = x_ref[...] + pe[None, :, :].astype(x_ref.dtype)


def _pick_tiles_3d(B, S, D, itemsize, budget):
    sub = max(1, 32 // itemsize)

    def step_bytes(tB, tS):
        io = 2 * 2 * tB * tS * D * itemsize
        pe = 2 * tS * D * 4
        bcast = tB * tS * D * 4
        return io + pe + bcast

    tB = B
    if B > 1 and step_bytes(B, sub) > budget:
        tB = min(B, max(1, budget // step_bytes(1, sub)))
    max_ts = budget // step_bytes(tB, 1)
    tS = S if max_ts >= S else max(sub, (max_ts // sub) * sub)

    # v7x megacore: prefer >= 2 grid steps.
    if pl.cdiv(B, tB) * pl.cdiv(S, tS) < 2:
        if S >= 2 * sub:
            tS = ((pl.cdiv(S, 2) + sub - 1) // sub) * sub
        elif B >= 2:
            tB = pl.cdiv(B, 2)          # batch is third-minor: no alignment constraint
    return tB, tS


# ---------------------------------------------------------------------------
# Wrapper
# ---------------------------------------------------------------------------
def positional_encoding(x, max_seq_len):
    """x: (B, S, D) with S <= max_seq_len. Returns x + pe[:S] (sinusoidal PE)."""
    B, S, D = x.shape
    assert S <= max_seq_len, "sequence length exceeds max_seq_len"

    itemsize = jnp.dtype(x.dtype).itemsize
    budget, vmem_limit = _vmem_budget_and_limit()

    lane_dense = (D % 128 == 0)
    pow2 = (D & (D - 1)) == 0

    if (not lane_dense) and pow2:
        # Lane-dense path: flatten (S, D) into one last axis tiled in multiples
        # of 128, so stores are unmasked full-lane vst's even when D < 128.
        F = S * D
        tB, tF = _pick_tiles_flat(B, F, itemsize, budget)
        grid = (pl.cdiv(B, tB), pl.cdiv(F, tF))
        cost = pl.CostEstimate(
            flops=6 * B * S * D,
            transcendentals=2 * S * D * grid[0],          # exp+sin per pe element per B-tile
            bytes_accessed=2 * B * S * D * itemsize,
        )
        out = pl.pallas_call(
            _make_flat_kernel(D),
            out_shape=jax.ShapeDtypeStruct((B, F), x.dtype),
            grid_spec=pltpu.PrefetchScalarGridSpec(
                num_scalar_prefetch=0,
                grid=grid,
                in_specs=[pl.BlockSpec((tB, tF), lambda b, f: (b, f))],
                out_specs=pl.BlockSpec((tB, tF), lambda b, f: (b, f)),
            ),
            compiler_params=pltpu.CompilerParams(
                dimension_semantics=("parallel", "parallel"),
                vmem_limit_bytes=vmem_limit,
            ),
            cost_estimate=cost,
            input_output_aliases={0: 0},   # pure add: in-place when x is donated
        )(x.reshape(B, F))
        return out.reshape(B, S, D)

    # TODO(synk): non-power-of-two D below 128 keeps the (B, S, D) layout and
    # pays masked lane stores; a lane-dense view would need a per-element
    # integer divide to recover (pos, col).
    tB, tS = _pick_tiles_3d(B, S, D, itemsize, budget)
    grid = (pl.cdiv(B, tB), pl.cdiv(S, tS))
    cost = pl.CostEstimate(
        flops=3 * B * S * D,
        transcendentals=grid[0] * (S * D + pl.cdiv(S, tS) * D),
        bytes_accessed=2 * B * S * D * itemsize,
    )
    return pl.pallas_call(
        _pos_enc_3d_kernel,
        out_shape=jax.ShapeDtypeStruct((B, S, D), x.dtype),
        grid_spec=pltpu.PrefetchScalarGridSpec(
            num_scalar_prefetch=0,
            grid=grid,
            in_specs=[pl.BlockSpec((tB, tS, D), lambda b, s: (b, s, 0))],
            out_specs=pl.BlockSpec((tB, tS, D), lambda b, s: (b, s, 0)),
        ),
        compiler_params=pltpu.CompilerParams(
            dimension_semantics=("parallel", "parallel"),
            vmem_limit_bytes=vmem_limit,
        ),
        cost_estimate=cost,
        input_output_aliases={0: 0},
    )(x)


def _reference(x, max_seq_len):
    """Plain-JAX replica of the PyTorch module for verification."""
    B, S, D = x.shape
    position = jnp.arange(max_seq_len, dtype=jnp.float32)[:, None]
    div_term = jnp.exp(jnp.arange(0, D, 2, dtype=jnp.float32)
                       * (-math.log(10000.0) / D))
    angles = position * div_term                      # (max_seq_len, D//2)
    pe = jnp.zeros((max_seq_len, D), dtype=jnp.float32)
    pe = pe.at[:, 0::2].set(jnp.sin(angles))
    pe = pe.at[:, 1::2].set(jnp.cos(angles))
    return x + pe[None, :S, :]


if __name__ == "__main__":
    B, S, D = 2, 8, 32
    MAX_SEQ_LEN = 16

    key = jax.random.PRNGKey(0)
    x = jax.random.normal(key, (B, S, D), dtype=jnp.float32)

    # Reference computed first (the kernel aliases/donates its input buffer
    # when the caller allows it).
    ref = _reference(x, MAX_SEQ_LEN)

    out = positional_encoding(x, MAX_SEQ_LEN)
    out = jax.block_until_ready(out)

    assert out.shape == (B, S, D)
    assert jnp.allclose(out, ref, atol=1e-5, rtol=1e-5)

    print("KERNEL_OK")
</pallas_src>

<mosaic_0001>
module attributes {stable_mosaic.version = 11 : i64} {
  func.func @kernel(%arg0: i32, %arg1: i32, %arg2: memref<2x128xf32, #tpu.memory_space<vmem>>, %arg3: memref<2x128xf32, #tpu.memory_space<vmem>>) attributes {dimension_semantics = [#tpu.dimension_semantics<parallel>, #tpu.dimension_semantics<parallel>], iteration_bounds = array<i64: 1, 2>, scalar_prefetch = 0 : i64, scratch_operands = 0 : i64, tpu.core_type = #tpu.core_type<tc>, window_params = [{transform_indices = @transform_0, window_bounds = array<i64: 2, 128>}, {transform_indices = @transform_1, window_bounds = array<i64: 2, 128>}]} {
    %c128_i32 = arith.constant 128 : i32
    %0 = arith.muli %arg1, %c128_i32 : i32
    %1 = tpu.iota {dimensions = array<i32: 1>} : vector<1x128xi32>
    %2 = vector.broadcast %0 : i32 to vector<1x128xi32>
    %3 = arith.addi %2, %1 : vector<1x128xi32>
    %c5_i32 = arith.constant 5 : i32
    %4 = vector.broadcast %c5_i32 : i32 to vector<1x128xi32>
    %5 = arith.shrsi %3, %4 : vector<1x128xi32>
    %6 = arith.sitofp %5 : vector<1x128xi32> to vector<1x128xf32>
    %c31_i32 = arith.constant 31 : i32
    %7 = vector.broadcast %c31_i32 : i32 to vector<1x128xi32>
    %8 = arith.andi %3, %7 : vector<1x128xi32>
    %c1_i32 = arith.constant 1 : i32
    %9 = vector.broadcast %c1_i32 : i32 to vector<1x128xi32>
    %10 = arith.andi %8, %9 : vector<1x128xi32>
    %11 = arith.subi %8, %10 : vector<1x128xi32>
    %12 = arith.sitofp %11 : vector<1x128xi32> to vector<1x128xf32>
    %cst = arith.constant -0.287823141 : f32
    %13 = vector.broadcast %cst : f32 to vector<1x128xf32>
    %14 = arith.mulf %12, %13 : vector<1x128xf32>
    %15 = math.exp %14 : vector<1x128xf32>
    %16 = arith.mulf %6, %15 : vector<1x128xf32>
    %17 = arith.sitofp %10 : vector<1x128xi32> to vector<1x128xf32>
    %cst_0 = arith.constant 1.57079637 : f32
    %18 = vector.broadcast %cst_0 : f32 to vector<1x128xf32>
    %19 = arith.mulf %17, %18 : vector<1x128xf32>
    %20 = arith.addf %16, %19 : vector<1x128xf32>
    %21 = math.sin %20 : vector<1x128xf32>
    %c0 = arith.constant 0 : index
    %c0_1 = arith.constant 0 : index
    %22 = vector.load %arg2[%c0, %c0_1] : memref<2x128xf32, #tpu.memory_space<vmem>>, vector<2x128xf32>
    %23 = vector.broadcast %21 : vector<1x128xf32> to vector<2x128xf32>
    %24 = arith.addf %22, %23 : vector<2x128xf32>
    %c0_2 = arith.constant 0 : index
    %c0_3 = arith.constant 0 : index
    %25 = vector.load %arg3[%c0_2, %c0_3] : memref<2x128xf32, #tpu.memory_space<vmem>>, vector<2x128xf32>
    tpu.vector_store %arg3[%c0_2, %c0_3], %24 {strides = array<i32>} : memref<2x128xf32, #tpu.memory_space<vmem>>, vector<2x128xf32>,
    return
  }
  func.func @transform_0(%arg0: i32, %arg1: i32) -> (i32, i32) {
    %c0_i32 = arith.constant 0 : i32
    return %arg0, %arg1 : i32, i32
  }
  func.func @transform_1(%arg0: i32, %arg1: i32) -> (i32, i32) {
    %c0_i32 = arith.constant 0 : i32
    return %arg0, %arg1 : i32, i32
  }
}

</mosaic_0001>

<bundles_post_ra>
// kernel: tpu_custom_call.1
= control target key start
LH: loop header
LB: loop body
LE: loop exit
PB: predicated region body
PF: predicated region fallthrough
CT: control target
= control target key end

     0   :  { %6 = vsyncpa [#allocation3], 0  ;;  %s802_s0 = inlined_call_operand.hbm [shape: f32[2,256], index: 0, kind: input, shape index: {}, may-alias: {0,1}]   ;;  %s803_s1 = inlined_call_operand.hbm [shape: f32[2,256], index: 1, kind: output, shape index: {}, may-alias: {0,1}]  }
   0x1   :  { %8 = vsyncpa [#allocation3 + $0x1], 0 }
   0x2   :  { %9 = vsyncpa [#allocation4], 0 }
   0x3   :  { %11 = vsyncpa [#allocation4 + $0x1], 0  ;;  %s601_s6 = smov 0   ;;  %s603_s7 = smov 0  }
   0x4   :  { %s605_s8 = smov 0   ;;  %s607_s9 = smov 0  }
   0x5   :  { %s609_s10 = smov 0   ;;  %s611_s11 = smov 0  }
   0x6 LB: > { %s373_s12 = sadd.s32 4294967295, %s581_s11   ;;  %s374_s13 = sadd.s32 4294967294, %s581_s11   ;;  %s581_s11 = sphi %s611_s11, %s17_s11   ;;  %s577_s10 = sphi %s609_s10, %s819_s10   ;;  %s573_s9 = sphi %s607_s9, %s818_s9   ;;  %s569_s8 = sphi %s605_s8, %s817_s8   ;;  %s565_s7 = sphi %s603_s7, %s816_s7   ;;  %s561_s6 = sphi %s601_s6, %s815_s6  }
   0x7   : > { %s26_s14 = sadd.s32 1, %s577_s10  ;;  %s38_s15 = sadd.s32 1, %s569_s8 }
   0x8   : > { %p27_p0 = scmp.ge.s32.totalorder %s26_s14, 2  ;;  %p45_p1 = scmp.ne.s32.totalorder %s569_s8, %s565_s7 }
   0x9   : > { %p46_p2 = scmp.eq.s32.totalorder %s581_s11, 0  ;;  %p51_p3 = scmp.ne.s32.totalorder %s565_s7, %s561_s6 }
   0xa   : > { %s821_s14 = smov (%p27_p0, %s26_s14), 0  ;;  %p52_p5 = scmp.eq.s32.totalorder %s373_s12, 0 }
   0xb   : > { %p642_p4 = por %p46_p2, %p45_p1  ;;  %s34_s17 = ssub.s32 %s577_s10, %s821_s14 }
   0xc   : > { %p77_p6 = scmp.eq.s32.totalorder %s373_s12, 1  ;;  %p36_p7 = scmp.eq.s32.totalorder %s34_s17, 0 }
   0xd   : > { %p648_p8 = por %p52_p5, %p51_p3  ;;  %p83_p10 = scmp.eq.s32.totalorder %s374_s13, 1 }
   0xe   : > { %p652_p9 = por %p77_p6, %p45_p1  ;;  %p407_p13 = scmp.lt.s32.totalorder %s581_s11, 2 }
   0xf   : > { %s657_s20 = scalar_select %p36_p7, %s569_s8, %s38_s15  }
  0x10   : > { %s807_s19 = scalar_select %p652_p9, 1, 0 }
  0x11   : > { %p659_p11 = por %p83_p10, %p51_p3  ;;  %s103_s22 = sand.u32 1, %s569_s8  }
  0x12   : > { %s377_s23 = sshll.u32 %s103_s22, 1  ;;  %s378_s24 = sshll.u32 %s577_s10, 5 }
  0x13   : > { %s808_s21 = scalar_select %p659_p11, 1, 0 }
  0x14   : > { %s670_s27 = scalar_lea.hbm %s802_s0, %s378_s24  ;;  %s107_s28 = scalar_lea.vmem [#allocation2], %s377_s23 }
  0x15   : > { %s116_s29 = sshll.u32 %s107_s28, 4  ;;  %p676_p0 = pnand %p407_p13, %p642_p4  ;;  %s672_s29 = int_to_ptr.vmem [resolvable:$true] %s116_s29 }
  0x16   : > { %s104_s2 = scalar_lea.sflag [#allocation3], %s103_s22  ;;  %s469_s3 = scalar_lea.hbm %s670_s27, 32 }
  0x17   : > { %p470_p3 = scmp.ne.s32.totalorder %s670_s27, %s469_s3  ;;  %p471_p5 = pneg %p676_p0 }
  0x18   : > { %s474_s12 = scalar_lea.hbm %s802_s0, 64  ;;  %p475_p4 = scmp.lt.u32.totalorder %s670_s27, %s802_s0 }
  0x19   : > { %p472_p6 = pnand %p471_p5, %p470_p3  ;;  %p476_p10 = scmp.lt.u32.totalorder %s474_s12, %s469_s3 }
  0x1a   : > { %p478_p12 = scmp.lt.u32.totalorder %s469_s3, %s670_s27 }
  0x1b   : > { %p473_p7 = pneg %p472_p6  ;;  %p477_p13 = por %p476_p10, %p475_p4 }
  0x1d   : > { %p479_p1 = por %p478_p12, %p477_p13 }
  0x1f   : > { %p480_p2 = pnand %p479_p1, %p473_p7 }
  0x21   : > { %483 = shalt.err (!%p480_p2)
}
  0x22   : > { %s484_s16 = scalar_lea.vmem %s672_s29, 32  ;;  %s583_s17 = smov [#allocation2]  }
  0x23   : > { %p485_p3 = scmp.ne.s32.totalorder %s672_s29, %s484_s16  ;;  %s489_s22 = sshll.u32 %s583_s17, 4  ;;  %s490_s22 = int_to_ptr.vmem [resolvable:$false] %s489_s22 }
  0x24   : > { %s491_s23 = scalar_lea.vmem %s490_s22, 64  ;;  %p492_p9 = scmp.lt.s32.totalorder %s672_s29, %s490_s22 }
  0x25   : > { %p487_p6 = pnand %p485_p3, %p471_p5  ;;  %p493_p4 = scmp.lt.s32.totalorder %s491_s23, %s484_s16 }
  0x27   : > { %p488_p11 = pneg %p487_p6  ;;  %p494_p10 = por %p493_p4, %p492_p9 }
  0x29   : > { %p495_p12 = pnand %p494_p10, %p488_p11 }
  0x2b   : > { %498 = shalt.err (!%p495_p12)
}
  0x2c   : > { %402 = dma.hbm_to_vmem [thread:$0]  (!%p676_p0), %s670_s27, 32, %s672_s29, %s104_s2  }
  0x2d   : > { %p810_p1 = scmp.lt.s32.totalorder %s581_s11, 3  ;;  %p811_p2 = scmp.ge.s32.totalorder %s581_s11, 1 }
  0x2f   : > { %p122_p5 = pnand %p811_p2, %p810_p1 }
  0x30   : > { %s712_s24 = sand.u32 (!%p122_p5), 1, %s565_s7  }
  0x31   : > { %125 = sbr.rel (%p122_p5) target bundleno = 186 (0xba), region = 24  ;;  %s380_s25 = sshll.u32 (!%p122_p5), %s712_s24, 1 }
  0x32   : > { %s128_s26 = scalar_lea.sflag (!%p122_p5), [#allocation3], %s712_s24  ;;  %s718_s28 = scalar_lea.vmem (!%p122_p5), [#allocation2], %s380_s25 }
  0x38   : > { %552 = dma.done.wait (%p648_p8), %s128_s26, 32  }
  0x39   : > { %554 = vsyncadd (%p648_p8), %s128_s26, 4294967264  ;;  %s382_s27 = sshll.u32 %s573_s9, 7  ;;  %v151_v0 = vlaneseq  ;;  %v584_v28 = vmov 683565275   ;;  %v585_v30 = vmov 2475754826  }
  0x3a   : > { %v153_v1 = vstv %s382_s27  ;;  %v586_v32 = vmov 2131351028   ;;  %v587_v34 = vmov 2102212464   ;;  %v588_v36 = vmov 920167782  }
  0x3b   : > { %v152_v2 = vand.u32 127, %v151_v0  ;;  %v589_v43 = vmov 1326507024   ;;  %s149_s18 = scalar_lea.vmem [#allocation5], %s380_s25  ;;  %s388_s30 = sshll.u32 %s573_s9, 5 }
  0x3c   : > { %s291_s29 = sshll.u32 %s149_s18, 4  ;;  %s755_s4 = scalar_lea.hbm %s803_s1, %s388_s30  ;;  %s750_s29 = int_to_ptr.vmem [resolvable:$true] %s291_s29 }
  0x3d   : > { %v154_v3 = vadd.s32 %v153_v1, %v152_v2  ;;  %s276_s5 = scalar_lea.sflag [#allocation4], %s712_s24  ;;  %s499_s12 = scalar_lea.vmem %s750_s29, 32 }
  0x3e   : > { %p500_p8 = scmp.ne.s32.totalorder %s750_s29, %s499_s12  ;;  %p812_p9 = scmp.ne.s32.totalorder %s807_s19, 0 }
  0x3f   : > { %v157_v4 = vand.u32 31, %v154_v3  ;;  %v155_v10 = vshra.s32 %v154_v3, 5  ;;  %s590_s9 = smov [#allocation5]  }
  0x40   : > { %p501_p11 = pnand %p500_p8, %p812_p9  ;;  %s503_s13 = sshll.u32 %s590_s9, 4  ;;  %s504_s13 = int_to_ptr.vmem [resolvable:$false] %s503_s13 }
  0x41   : > { %v158_v5 = vand.u32 1, %v157_v4  ;;  %v156_v12 = vcvt.s32.f32 %v155_v10  ;;  %s505_s15 = scalar_lea.vmem %s504_s13, 64  ;;  %p506_p7 = scmp.lt.s32.totalorder %s750_s29, %s504_s13 }
  0x42   : > { %p502_p0 = pneg %p501_p11  ;;  %p507_p13 = scmp.lt.s32.totalorder %s505_s15, %s499_s12 }
  0x43   : > { %v159_v6 = vsub.s32 %v157_v4, %v158_v5  ;;  %v165_v11 = vcvt.s32.f32 %v158_v5 }
  0x44   : > { %p508_p3 = por %p507_p13, %p506_p7 }
  0x45   : > { %v160_v7 = vcvt.s32.f32 %v159_v6  ;;  %v166_v13 = vmul.f32 1.5707964, %v165_v11 }
  0x46   : > { %p509_p6 = pnand %p508_p3, %p502_p0 }
  0x47   : > { %v161_v8 = vmul.f32 -0.28782314, %v160_v7 }
  0x49   : > { %v162_v9 = vmul.f32 1.442695, %v161_v8 }
  0x4b   : > { %463 = vpow2.f32 %v162_v9 }
  0x55   : > { %v464_v14 = vpop.eup %463 }
  0x56   : > { %v164_v15 = vmul.f32 %v464_v14, %v156_v12 }
  0x58   : > { %v725_v16 = vadd.f32 %v166_v13, %v164_v15 }
  0x5a   : > { %v171_v17 = vand.u32 2139095040, %v725_v16  ;;  %v168_v19 = vand.u32 2147483647, %v725_v16  ;;  %vm170_vm7 = vcmp.lt.s32.totalorder %v725_v16, 0  ;;  %vm260_vm12 = vweird.f32 %v725_v16 }
  0x5c   : > { %v172_v18 = vshrl.u32 %v171_v17, 23  ;;  %v175_v22 = vand.u32 8388607, %v168_v19  ;;  %vm169_vm8 = vcmp.le.f32.partialorder %v168_v19, 0.7853982 }
  0x5e   : > { %v383_v20 = vadd.s32 4294967169, %v172_v18  ;;  %v176_v25 = vor.u32 8388608, %v175_v22 }
  0x60   : > { %v178_v21 = vadd.s32 1, %v383_v20  ;;  %v216_v45 = vshll.u32 %v176_v25, 8 }
  0x62   : > { %vm179_vm0 = vcmp.gt.s32.totalorder %v178_v21, 0 }
  0x63   : > { %v180_v23 = vsel %vm179_vm0, %v178_v21, 0 }
  0x64   : > { %v182_v24 = vand.u32 31, %v180_v23  ;;  %v181_v26 = vshrl.u32 %v180_v23, 5 }
  0x66   : > { %v183_v27 = vsub.s32 32, %v182_v24  ;;  %v185_v29 = vshll.u32 %v584_v28, %v182_v24  ;;  %v188_v31 = vshll.u32 %v585_v30, %v182_v24  ;;  %v191_v33 = vshll.u32 %v586_v32, %v182_v24 }
  0x67   : > { %v194_v35 = vshll.u32 %v587_v34, %v182_v24  ;;  %v197_v37 = vshll.u32 %v588_v36, %v182_v24  ;;  %vm200_vm1 = vcmp.lt.s32.totalorder %v181_v26, 1  ;;  %vm203_vm2 = vcmp.lt.s32.totalorder %v181_v26, 4 }
  0x68   : > { %v184_v38 = vshrl.u32 %v584_v28, %v183_v27  ;;  %v186_v39 = vshrl.u32 %v585_v30, %v183_v27  ;;  %v189_v40 = vshrl.u32 %v586_v32, %v183_v27  ;;  %v192_v41 = vshrl.u32 %v587_v34, %v183_v27 }
  0x69   : > { %v195_v42 = vshrl.u32 %v588_v36, %v183_v27  ;;  %v198_v44 = vshrl.u32 %v589_v43, %v183_v27  ;;  %vm201_vm3 = vcmp.lt.s32.totalorder %v181_v26, 2  ;;  %vm202_vm4 = vcmp.lt.s32.totalorder %v181_v26, 3  ;;  %v272_v43 = vld [vmem:[%s718_s28] sm:$0x3] }
  0x6a   : > { %v187_v46 = vor.u32 %v186_v39, %v185_v29  ;;  %v190_v47 = vor.u32 %v189_v40, %v188_v31  ;;  %v193_v48 = vor.u32 %v192_v41, %v191_v33 }
  0x6b   : > { %v196_v49 = vor.u32 %v195_v42, %v194_v35  ;;  %v199_v50 = vor.u32 %v198_v44, %v197_v37 }
  0x6c   : > { %v204_v51 = vsel %vm200_vm1, %v184_v38, %v187_v46  ;;  %v205_v52 = vsel %vm203_vm2, %v193_v48, 2102212464  ;;  %v208_v53 = vsel %vm200_vm1, %v187_v46, %v190_v47  ;;  %v212_v54 = vsel %vm200_vm1, %v190_v47, %v193_v48 }
  0x6d   : > { %v206_v55 = vsel %vm202_vm4, %v190_v47, %v205_v52  ;;  %v209_v56 = vsel %vm203_vm2, %v196_v49, 920167782  ;;  %v213_v57 = vsel %vm203_vm2, %v199_v50, 1326507024 }
  0x6e   : > { %v210_v58 = vsel %vm202_vm4, %v193_v48, %v209_v56  ;;  %v214_v59 = vsel %vm202_vm4, %v196_v49, %v213_v57  ;;  %v207_v60 = vsel %vm201_vm3, %v204_v51, %v206_v55 }
  0x6f   : > { %v211_v61 = vsel %vm201_vm3, %v208_v53, %v210_v58  ;;  %v215_v62 = vsel %vm201_vm3, %v212_v54, %v214_v59  ;;  %v223_v3 = vmul.u32 %v216_v45, %v207_v60 }
  0x70   : > { %v731_v63 = vmul.u32.u64.low %v216_v45, %v215_v62  ;;  %v732_v0 = vmul.u32.u64.high %v216_v45, %v215_v62, %v731_v63  ;;  %v734_v1 = vmul.u32.u64.low %v216_v45, %v211_v61  ;;  %v735_v2 = vmul.u32.u64.high %v216_v45, %v211_v61, %v734_v1 }
  0x72   : > { %vm225_vm5 = vc.u32 %v732_v0, %v734_v1  ;;  %v226_v4 = vadd.s32 1, %v735_v2  ;;  %v224_v15 = vadd.s32 %v734_v1, %v732_v0 }
  0x74   : > { %v227_v5 = vsel %vm225_vm5, %v226_v4, %v735_v2 }
  0x75   : > { %v228_v6 = vadd.s32 %v227_v5, %v223_v3 }
  0x77   : > { %v229_v7 = vadd.s32 536870912, %v228_v6 }
  0x79   : > { %v230_v8 = vshrl.u32 %v229_v7, 30 }
  0x7b   : > { %v231_v9 = vshll.u32 %v230_v8, 30  ;;  %v254_v29 = vsub.s32 4, %v230_v8 }
  0x7d   : > { %v232_v10 = vsub.s32 %v228_v6, %v231_v9  ;;  %v255_v32 = vsel %vm170_vm7, %v254_v29, %v230_v8 }
  0x7e   : > { %v257_v35 = vsel %vm169_vm8, 0, %v255_v32 }
  0x7f   : > { %v234_v11 = vsub.s32 0, %v232_v10  ;;  %v261_v36 = vadd.s32 3, %v257_v35 }
  0x81   : > { %v384_v12 = vmin.u32 %v234_v11, %v232_v10  ;;  %v262_v37 = vand.u32 3, %v261_v36 }
  0x83   : > { %v236_v13 = vclz %v384_v12  ;;  %vm267_vm9 = vcmp.eq.s32.totalorder %v262_v37, 2  ;;  %vm264_vm10 = vcmp.eq.s32.totalorder %v262_v37, 0  ;;  %vm263_vm11 = vcmp.lt.s32.totalorder %v262_v37, 2 }
  0x85   : > { %v385_v14 = vadd.s32 4294967294, %v236_v13 }
  0x87   : > { %vm386_vm6 = vcmp.lt.s32.totalorder %v385_v14, 0 }
  0x88   : > { %v239_v17 = vsel %vm386_vm6, 0, %v385_v14 }
  0x89   : > { %v240_v18 = vsub.s32 32, %v239_v17  ;;  %v241_v20 = vshll.u32 %v232_v10, %v239_v17  ;;  %v244_v21 = vsub.s32 4294967266, %v239_v17 }
  0x8b   : > { %v242_v22 = vshrl.u32 %v224_v15, %v240_v18  ;;  %v245_v23 = vadd.s32 127, %v244_v21 }
  0x8d   : > { %v243_v24 = vor.u32 %v242_v22, %v241_v20  ;;  %v246_v25 = vshll.u32 %v245_v23, 23 }
  0x8f   : > { %v247_v26 = vor.u32 4788187, %v246_v25  ;;  %v250_v27 = vcvt.s32.f32 %v243_v24 }
  0x91   : > { %v248_v28 = vand.u32 2147483647, %v247_v26 }
  0x93   : > { %v251_v30 = vmul.f32 %v250_v27, %v248_v28 }
  0x95   : > { %v252_v31 = vxor.u32 2147483648, %v251_v30 }
  0x97   : > { %v253_v33 = vsel %vm170_vm7, %v252_v31, %v251_v30 }
  0x98   : > { %v256_v34 = vsel %vm169_vm8, %v725_v16, %v253_v33 }
  0x99   : > { %465 = vcosq.f32 %v256_v34 }
  0x9a   : > { %467 = vsinq.f32 %v256_v34 }
  0xa3   : > { %v466_v38 = vpop.eup %465 }
  0xa4   : > { %v468_v39 = vpop.eup %467  ;;  %v268_v40 = vxor.u32 2147483648, %v466_v38 }
  0xa5   : > { %v265_v19 = vxor.u32 2147483648, %v468_v39 }
  0xa6   : > { %v269_v41 = vsel %vm267_vm9, %v268_v40, %v468_v39 }
  0xa7   : > { %v266_v42 = vsel %vm264_vm10, %v466_v38, %v265_v19 }
  0xa8   : > { %v270_v44 = vsel %vm263_vm11, %v266_v42, %v269_v41 }
  0xa9   : > { %v271_v45 = vsel %vm260_vm12, nan, %v270_v44 }
  0xaa   : > { %v273_v46 = vadd.f32 %v272_v43, %v271_v45 }
  0xac   : > { %274 = vst [vmem:[%s149_s18] sm:$0x3] %v273_v46 }
  0xad   : > { %512 = shalt.err (!%p509_p6)
}
  0xae   : > { %s513_s16 = scalar_lea.hbm %s755_s4, 32  ;;  %s517_s23 = scalar_lea.hbm %s803_s1, 64 }
  0xaf   : > { %p514_p4 = scmp.ne.s32.totalorder %s755_s4, %s513_s16  ;;  %p518_p1 = scmp.lt.u32.totalorder %s755_s4, %s803_s1 }
  0xb0   : > { %p519_p2 = scmp.lt.u32.totalorder %s517_s23, %s513_s16  ;;  %p521_p8 = scmp.lt.u32.totalorder %s513_s16, %s755_s4 }
  0xb1   : > { %p515_p10 = pnand %p514_p4, %p812_p9 }
  0xb2   : > { %p520_p5 = por %p519_p2, %p518_p1 }
  0xb3   : > { %p516_p12 = pneg %p515_p10 }
  0xb4   : > { %p522_p11 = por %p521_p8, %p520_p5 }
  0xb6   : > { %p523_p0 = pnand %p522_p11, %p516_p12 }
  0xb8   : > { %526 = shalt.err (!%p523_p0)
}
  0xb9   : > { %397 = dma.vmem_to_hbm [thread:$0]  (%p812_p9), %s750_s29, 32, %s755_s4, %s276_s5  }
  0xba PF: > { %s303_s26 = sand.u32 1, %s561_s6   ;;  %p813_p7 = scmp.ne.s32.totalorder %s808_s21, 0 }
  0xbb   : > { %p814_p13 = scmp.ge.s32.totalorder %s581_s11, 2  ;;  %s304_s28 = scalar_lea.sflag [#allocation4], %s303_s26 }
  0xbd   : > { %p404_p3 = pnand %p814_p13, %p813_p7 }
  0xbf   : > { %556 = dma.done.wait (!%p404_p3), %s304_s28, 32  }
  0xc0   : > { %558 = vsyncadd (!%p404_p3), %s304_s28, 4294967264  ;;  %s17_s11 = sadd.s32 1, %s581_s11   ;;  %s815_s6 = smov %s565_s7 }
  0xc1   : > { %p14_p6 = scmp.ge.s32.totalorder %s17_s11, 4   ;;  %s816_s7 = smov %s569_s8 }
  0xc2   : > { %s817_s8 = smov %s657_s20  ;;  %s818_s9 = smov %s577_s10 }
  0xc3   : > { %s819_s10 = smov %s821_s14  ;;  %16 = sbr.rel (!%p14_p6) target bundleno = 6 (0x6), region = 69 }
  0xca   :  { %309 = vsyncpa [#allocation3], 1 }
  0xcb   :  { %311 = vsyncpa [#allocation3 + $0x1], 1 }
  0xcc   :  { %312 = vsyncpa [#allocation4], 1 }
  0xcd   :  { %314 = vsyncpa [#allocation4 + $0x1], 1 }

</bundles_post_ra>
